<compile_context>
chip_gen: v7x
topology: tpu7x:2x2x1
jax: 0.10.0
libtpu: 0.0.40
codegen_flags: <defaults>
</compile_context>

<pallas_src>
import functools

import jax
import jax.numpy as jnp
from jax import lax
from jax.experimental import pallas as pl
from jax.experimental.pallas import tpu as pltpu


def _round_up(v, m):
    return ((v + m - 1) // m) * m


def _head_kernel(x_ref, w_att_ref, b_att_ref, w_cls_ref, b_cls_ref, out_ref,
                 *, s_real):
    # x_ref:     (Bt, S_pad, H_pad)  c_encode tile (compute dtype, e.g. bf16)
    # w_att_ref: (H_pad, H_pad)      SelfAttnMatch weight, pre-transposed (x @ W^T)
    # b_att_ref: (1, H_pad)          f32 (zero in padded columns)
    # w_cls_ref: (H_pad, C_pad)      classifier weight, pre-transposed + padded
    # b_cls_ref: (1, C_pad)          f32 (padding columns hold -1e30)
    # out_ref:   (1, Bt, C_pad)      f32 log-probabilities for this batch tile
    Bt, S, H = x_ref.shape
    x = x_ref[...]                                      # (Bt, S, H) compute dtype

    # ---- SelfAttnMatch projection: relu(x @ W_att^T + b_att), f32 accumulate.
    # S is padded to the sublane pack, so this reshape is a free sublane merge.
    x2 = x.reshape(Bt * S, H)
    xp = jnp.dot(x2, w_att_ref[...], preferred_element_type=jnp.float32)
    xp = jnp.maximum(xp + b_att_ref[...], 0.0)          # (Bt*S, H) f32
    x_proj = xp.astype(x.dtype).reshape(Bt, S, H)       # bf16 operands for MXU

    # ---- scores = x_proj @ x_proj^T (f32 accumulate) -> (Bt, S, S)
    # TODO(synk): if bundle dumps show the XLU transpose slot binding here,
    #             materialize x_proj^T once per tile instead.
    scores = jnp.einsum('bsh,bth->bst', x_proj, x_proj,
                        preferred_element_type=jnp.float32)
    if s_real < S:
        # Padded keys must not receive any softmax mass.
        k_ids = lax.broadcasted_iota(jnp.int32, (1, 1, S), 2)
        scores = jnp.where(k_ids < s_real, scores, -1e30)

    # ---- softmax over keys (f32); normalization on the EUP reciprocal.
    m = jnp.max(scores, axis=-1, keepdims=True)
    e = jnp.exp(scores - m)                             # padded keys -> exactly 0
    denom = jnp.sum(e, axis=-1, keepdims=True)
    alpha = e * pl.reciprocal(denom, approx=True)       # (Bt, S, S) f32

    # ---- pooled = sum_q (alpha @ x) == (sum_q alpha) @ x  (never build matched)
    # Both contractions run on the MXU (M=1 batched matmuls); the ones/zeros row
    # simultaneously drops the padded query rows.
    q_ids = lax.broadcasted_iota(jnp.int32, (1, 1, S), 2)
    q_row = jnp.broadcast_to((q_ids < s_real).astype(jnp.float32), (Bt, 1, S))
    alpha_sum = jnp.einsum('bqs,bsk->bqk', q_row, alpha,
                           preferred_element_type=jnp.float32)      # (Bt, 1, S)
    pooled = jnp.einsum('bqk,bkh->bqh', alpha_sum, x.astype(jnp.float32),
                        preferred_element_type=jnp.float32)[:, 0, :]  # (Bt, H)

    # ---- classifier + log_softmax (exact f32 math; padded classes hold -1e30).
    logits = jnp.dot(pooled.astype(w_cls_ref.dtype), w_cls_ref[...],
                     preferred_element_type=jnp.float32) + b_cls_ref[...]
    lm = jnp.max(logits, axis=-1, keepdims=True)
    lse = lm + jnp.log(jnp.sum(jnp.exp(logits - lm), axis=-1, keepdims=True))
    out_ref[0] = (logits - lse).astype(out_ref.dtype)


def _vmem_policy():
    """Return (per-tile budget, vmem_limit_bytes), generation aware.

    v5e/v6e have 128 MiB physical VMEM; v7x has 64 MiB per TensorCore, so the
    budget must stay conservative there."""
    mib = 1024 * 1024
    try:
        cap = int(pltpu.get_tpu_info().vmem_capacity_bytes)
    except Exception:           # unknown -> assume the smallest (v7x-sized) VMEM
        cap = 64 * mib
    if cap >= 100 * mib:        # v5e / v6e
        return 48 * mib, 96 * mib
    return 20 * mib, min(48 * mib, (3 * cap) // 4)      # v7x (or unknown)


def _pick_batch_tile(B, s_pad, h_pad, c_pad, itemsize, budget_bytes):
    """Largest divisor of B whose per-tile VMEM working set fits the budget.

    Capped at B//2 so the 'parallel' grid axis has >= 2 steps (keeps both v7x
    TensorCores busy; the extra ~0.35us grid step is noise on 1-TC chips).
    Prefers Bt with Bt*S aligned to the MXU M granularity when it costs <= 2x.
    Fails loudly if even Bt = 1 does not fit."""
    # Resident weights/biases (counted twice in case the pipeline buffers them).
    weights = 2 * (h_pad * h_pad + h_pad * c_pad) * itemsize \
        + 2 * (h_pad + c_pad) * 4

    def tile_bytes(bt):
        x_blk = 2 * bt * s_pad * h_pad * itemsize       # double-buffered input
        proj = bt * s_pad * h_pad * (4 + itemsize)      # f32 projection + bf16 copy
        x_f32 = bt * s_pad * h_pad * 4                  # f32 upcast for pooling
        attn = 2 * bt * s_pad * s_pad * 4               # scores & exp/alpha (~2 live)
        small = bt * (2 * s_pad + h_pad + c_pad) * 4
        out_blk = 2 * bt * c_pad * 4                    # double-buffered output
        return weights + x_blk + proj + x_f32 + attn + small + out_blk

    if tile_bytes(1) > budget_bytes:
        raise ValueError(
            "MWMLNet head: a single-row batch tile needs "
            f"{tile_bytes(1)} VMEM bytes (> budget {budget_bytes}); the "
            "sequence is too long for the un-tiled attention path. "
            "TODO(synk): flash-style key-axis tiling for long sequences.")

    cap = max(1, B // 2)
    fitting = [bt for bt in range(1, cap + 1)
               if B % bt == 0 and tile_bytes(bt) <= budget_bytes]
    if not fitting:
        fitting = [1]
    best = max(fitting)
    aligned = [bt for bt in fitting
               if (bt * s_pad) % 128 == 0 and 2 * bt >= best]
    return max(aligned) if aligned else best


def mwmlnet_lm_classifier_head(c_encode, w_att, b_att, w_cls, b_cls,
                               *, batch_tile=None, compute_dtype=jnp.bfloat16):
    """Head of MWMLNetLMClassifier.forward applied to a precomputed c_encode.

    c_encode: (B, S, H) backbone output.
    w_att:    (H, H) torch-layout (out, in) SelfAttnMatch linear weight; b_att: (H,)
    w_cls:    (C, H) torch-layout classifier weight; b_cls: (C,)
    Returns (B, C) f32 log-probabilities.
    """
    B, S, H = c_encode.shape
    C = w_cls.shape[0]

    itemsize = jnp.dtype(compute_dtype).itemsize
    h_pad = _round_up(H, 128)                    # lane-dense hidden axis
    c_pad = _round_up(C, 128)                    # lane-dense class axis
    s_pack = max(8, 32 // itemsize)              # sublane pack (16 for bf16)
    s_pad = _round_up(S, s_pack)

    budget, vmem_limit = _vmem_policy()
    bt = batch_tile if batch_tile is not None else _pick_batch_tile(
        B, s_pad, h_pad, c_pad, itemsize, budget)
    assert B % bt == 0, f"batch {B} must be divisible by batch tile {bt}"
    n_tiles = B // bt

    # Zero-pad to lane/sublane-friendly shapes (exactly masked in the kernel).
    x = jnp.pad(c_encode.astype(compute_dtype),
                ((0, 0), (0, s_pad - S), (0, h_pad - H)))
    w_att_t = jnp.pad(w_att.T.astype(compute_dtype),
                      ((0, h_pad - H), (0, h_pad - H)))
    b_att_r = jnp.pad(b_att.reshape(1, H).astype(jnp.float32),
                      ((0, 0), (0, h_pad - H)))
    w_cls_p = jnp.pad(w_cls.T.astype(compute_dtype),
                      ((0, h_pad - H), (0, c_pad - C)))
    b_cls_p = jnp.pad(b_cls.reshape(1, C).astype(jnp.float32),
                      ((0, 0), (0, c_pad - C)), constant_values=-1e30)

    cost = pl.CostEstimate(
        flops=(2 * B * s_pad * h_pad * h_pad        # projection
               + 2 * B * s_pad * s_pad * h_pad      # scores
               + 2 * B * s_pad * s_pad              # alpha column-sum
               + 2 * B * s_pad * h_pad              # pooled
               + 2 * B * h_pad * c_pad),            # classifier
        transcendentals=B * s_pad * s_pad + B * s_pad + B * (c_pad + 1),
        bytes_accessed=(B * s_pad * h_pad + h_pad * h_pad + h_pad * c_pad)
        * itemsize + (h_pad + c_pad) * 4 + B * c_pad * 4,
    )

    kernel = functools.partial(_head_kernel, s_real=S)

    out = pl.pallas_call(
        kernel,
        out_shape=jax.ShapeDtypeStruct((n_tiles, bt, c_pad), jnp.float32),
        grid_spec=pltpu.PrefetchScalarGridSpec(
            num_scalar_prefetch=0,
            grid=(n_tiles,),
            in_specs=[
                # Streamed per batch tile (auto double-buffered).
                pl.BlockSpec((bt, s_pad, h_pad), lambda b: (b, 0, 0)),
                # Weights/biases: constant index_map -> stay resident; the
                # pipeline does not refetch blocks whose index doesn't change.
                pl.BlockSpec((h_pad, h_pad), lambda b: (0, 0)),
                pl.BlockSpec((1, h_pad), lambda b: (0, 0)),
                pl.BlockSpec((h_pad, c_pad), lambda b: (0, 0)),
                pl.BlockSpec((1, c_pad), lambda b: (0, 0)),
            ],
            out_specs=pl.BlockSpec((1, bt, c_pad), lambda b: (b, 0, 0)),
        ),
        compiler_params=pltpu.CompilerParams(
            dimension_semantics=("parallel",),       # batch tiles independent
            vmem_limit_bytes=vmem_limit,             # generation-aware
        ),
        cost_estimate=cost,
    )(x, w_att_t, b_att_r, w_cls_p, b_cls_p)

    return out.reshape(B, c_pad)[:, :C]


def _reference(c_encode, w_att, b_att, w_cls, b_cls, compute_dtype=jnp.bfloat16):
    """Pure-JAX reference mirroring the kernel's bf16-operand / f32-accumulate
    boundaries (softmax division kept exact); uses the *unpadded* shapes, so it
    also validates the kernel's S/H padding + masking."""
    f32 = jnp.float32
    x = c_encode.astype(compute_dtype).astype(f32)
    w_att_t = w_att.T.astype(compute_dtype).astype(f32)
    xp = jax.nn.relu(jnp.einsum('bsh,hk->bsk', x, w_att_t) + b_att.astype(f32))
    xb = xp.astype(compute_dtype).astype(f32)
    scores = jnp.einsum('bsh,bth->bst', xb, xb)
    alpha = jax.nn.softmax(scores, axis=-1)
    pooled = jnp.einsum('bt,bth->bh', alpha.sum(axis=1), x)
    w_cls_t = w_cls.T.astype(compute_dtype).astype(f32)
    logits = jnp.dot(pooled.astype(compute_dtype).astype(f32), w_cls_t) \
        + b_cls.astype(f32)
    return jax.nn.log_softmax(logits, axis=-1)


if __name__ == "__main__":
    # Small shapes consistent with the module head: hidden_dim=32, n_class=4,
    # batch=4, seq=8.  c_encode stands in for the MWMLNet backbone output.
    B, S, H, C = 4, 8, 32, 4
    key = jax.random.PRNGKey(0)
    k1, k2, k3, k4, k5 = jax.random.split(key, 5)

    c_encode = jax.random.normal(k1, (B, S, H), dtype=jnp.float32)
    # nn.Linear(hidden_dim, hidden_dim): weight (H, H), bias (H,)
    w_att = jax.random.normal(k2, (H, H), dtype=jnp.float32) * 0.1
    b_att = jax.random.normal(k3, (H,), dtype=jnp.float32) * 0.1
    # nn.Linear(hidden_dim, n_class): weight (C, H), bias (C,)
    w_cls = jax.random.normal(k4, (C, H), dtype=jnp.float32) * 0.1
    b_cls = jax.random.normal(k5, (C,), dtype=jnp.float32) * 0.1

    # Default tile picker: B=4 -> bt=2 (two grid steps; exercises the streamed
    # batch axis, the padded-S masking path, and the two-TC-friendly split).
    out = mwmlnet_lm_classifier_head(c_encode, w_att, b_att, w_cls, b_cls)
    out = jax.block_until_ready(out)

    ref = _reference(c_encode, w_att, b_att, w_cls, b_cls)
    assert out.shape == (B, C)
    assert bool(jnp.all(jnp.isfinite(out)))
    # bf16 MXU operands + approx EUP reciprocal in the softmax -> ~1e-3 level
    # deviations versus the mirrored reference.
    assert jnp.allclose(out, ref, atol=5e-3, rtol=5e-3), (out, ref)

    print("KERNEL_OK")
</pallas_src>

<mosaic_0001>
module attributes {stable_mosaic.version = 11 : i64} {
  func.func @_head_kernel(%arg0: i32, %arg1: memref<2x16x128xbf16, #tpu.memory_space<vmem>>, %arg2: memref<128x128xbf16, #tpu.memory_space<vmem>>, %arg3: memref<1x128xf32, #tpu.memory_space<vmem>>, %arg4: memref<128x128xbf16, #tpu.memory_space<vmem>>, %arg5: memref<1x128xf32, #tpu.memory_space<vmem>>, %arg6: memref<1x2x128xf32, #tpu.memory_space<vmem>>) attributes {dimension_semantics = [#tpu.dimension_semantics<parallel>], iteration_bounds = array<i64: 2>, scalar_prefetch = 0 : i64, scratch_operands = 0 : i64, tpu.core_type = #tpu.core_type<tc>, window_params = [{transform_indices = @transform_0, window_bounds = array<i64: 2, 16, 128>}, {pipeline_mode = #tpu.pipeline_mode<synchronous>, transform_indices = @transform_1, window_bounds = array<i64: 128, 128>}, {pipeline_mode = #tpu.pipeline_mode<synchronous>, transform_indices = @transform_2, window_bounds = array<i64: 1, 128>}, {pipeline_mode = #tpu.pipeline_mode<synchronous>, transform_indices = @transform_3, window_bounds = array<i64: 128, 128>}, {pipeline_mode = #tpu.pipeline_mode<synchronous>, transform_indices = @transform_4, window_bounds = array<i64: 1, 128>}, {transform_indices = @transform_5, window_bounds = array<i64: 1, 2, 128>}]} {
    %c0 = arith.constant 0 : index
    %c0_0 = arith.constant 0 : index
    %c0_1 = arith.constant 0 : index
    %0 = vector.load %arg1[%c0, %c0_0, %c0_1] : memref<2x16x128xbf16, #tpu.memory_space<vmem>>, vector<2x16x128xbf16>
    %1 = vector.shape_cast %0 : vector<2x16x128xbf16> to vector<32x128xbf16>
    %c0_2 = arith.constant 0 : index
    %c0_3 = arith.constant 0 : index
    %2 = vector.load %arg2[%c0_2, %c0_3] : memref<128x128xbf16, #tpu.memory_space<vmem>>, vector<128x128xbf16>
    %cst = arith.constant dense<0.000000e+00> : vector<32x128xf32>
    %3 = tpu.matmul %1, %2, %cst {dimension_numbers = #tpu.dot_dimension_numbers<[1], [0], [0], [1], [0, 0, 1, 1], [], []>} : vector<32x128xbf16>, vector<128x128xbf16>, vector<32x128xf32> -> vector<32x128xf32>
    %c0_4 = arith.constant 0 : index
    %c0_5 = arith.constant 0 : index
    %4 = vector.load %arg3[%c0_4, %c0_5] : memref<1x128xf32, #tpu.memory_space<vmem>>, vector<1x128xf32>
    %5 = vector.broadcast %4 : vector<1x128xf32> to vector<32x128xf32>
    %6 = arith.addf %3, %5 : vector<32x128xf32>
    %cst_6 = arith.constant 0.000000e+00 : f32
    %7 = vector.broadcast %cst_6 : f32 to vector<32x128xf32>
    %8 = arith.maximumf %6, %7 : vector<32x128xf32>
    %9 = arith.truncf %8 : vector<32x128xf32> to vector<32x128xbf16>
    %10 = vector.shape_cast %9 : vector<32x128xbf16> to vector<2x16x128xbf16>
    "tpu.trace_start"() <{level = 10 : i32, message = "bsh,bth->bst"}> : () -> ()
    %cst_7 = arith.constant dense<0.000000e+00> : vector<2x16x16xf32>
    %11 = tpu.matmul %10, %10, %cst_7 {dimension_numbers = #tpu.dot_dimension_numbers<[2], [2], [1], [1], [0, 0, 0, 1, 1, 1], [0], [0]>} : vector<2x16x128xbf16>, vector<2x16x128xbf16>, vector<2x16x16xf32> -> vector<2x16x16xf32>
    "tpu.trace_stop"() : () -> ()
    %12 = tpu.iota {dimensions = array<i32: 2>} : vector<1x1x16xi32>
    %c8_i32 = arith.constant 8 : i32
    %13 = vector.broadcast %c8_i32 : i32 to vector<1x1x16xi32>
    %14 = arith.cmpi slt, %12, %13 : vector<1x1x16xi32>
    %cst_8 = arith.constant -1.000000e+30 : f32
    %15 = vector.shape_cast %14 : vector<1x1x16xi1> to vector<1x1x16xi1>
    %16 = vector.broadcast %15 : vector<1x1x16xi1> to vector<2x16x16xi1>
    %17 = vector.broadcast %cst_8 : f32 to vector<2x16x16xf32>
    %18 = arith.select %16, %11, %17 : vector<2x16x16xi1>, vector<2x16x16xf32>
    %cst_9 = arith.constant dense<0xFF800000> : vector<2x16xf32>
    %19 = vector.multi_reduction <maximumf>, %18, %cst_9 [2] : vector<2x16x16xf32> to vector<2x16xf32>
    %20 = vector.shape_cast %19 : vector<2x16xf32> to vector<2x16x1xf32>
    %21 = vector.broadcast %20 : vector<2x16x1xf32> to vector<2x16x16xf32>
    %22 = arith.subf %18, %21 : vector<2x16x16xf32>
    %23 = math.exp %22 : vector<2x16x16xf32>
    %cst_10 = arith.constant dense<0.000000e+00> : vector<2x16xf32>
    %24 = vector.multi_reduction <add>, %23, %cst_10 [2] : vector<2x16x16xf32> to vector<2x16xf32>
    %25 = vector.shape_cast %24 : vector<2x16xf32> to vector<2x16x1xf32>
    %26 = tpu.reciprocal %25 {approx = true} : vector<2x16x1xf32> -> vector<2x16x1xf32>
    %27 = vector.broadcast %26 : vector<2x16x1xf32> to vector<2x16x16xf32>
    %28 = arith.mulf %23, %27 : vector<2x16x16xf32>
    %29 = tpu.iota {dimensions = array<i32: 2>} : vector<1x1x16xi32>
    %c8_i32_11 = arith.constant 8 : i32
    %30 = vector.broadcast %c8_i32_11 : i32 to vector<1x1x16xi32>
    %31 = arith.cmpi slt, %29, %30 : vector<1x1x16xi32>
    %32 = arith.extui %31 : vector<1x1x16xi1> to vector<1x1x16xi32>
    %33 = arith.sitofp %32 : vector<1x1x16xi32> to vector<1x1x16xf32>
    %34 = vector.shape_cast %33 : vector<1x1x16xf32> to vector<1x1x16xf32>
    %35 = vector.broadcast %34 : vector<1x1x16xf32> to vector<2x1x16xf32>
    "tpu.trace_start"() <{level = 10 : i32, message = "bqs,bsk->bqk"}> : () -> ()
    %cst_12 = arith.constant dense<0.000000e+00> : vector<2x1x16xf32>
    %36 = tpu.matmul %35, %28, %cst_12 {dimension_numbers = #tpu.dot_dimension_numbers<[2], [1], [1], [2], [0, 0, 0, 1, 1, 2], [0], [0]>} : vector<2x1x16xf32>, vector<2x16x16xf32>, vector<2x1x16xf32> -> vector<2x1x16xf32>
    "tpu.trace_stop"() : () -> ()
    %37 = arith.extf %0 : vector<2x16x128xbf16> to vector<2x16x128xf32>
    "tpu.trace_start"() <{level = 10 : i32, message = "bqk,bkh->bqh"}> : () -> ()
    %cst_13 = arith.constant dense<0.000000e+00> : vector<2x1x128xf32>
    %38 = tpu.matmul %36, %37, %cst_13 {dimension_numbers = #tpu.dot_dimension_numbers<[2], [1], [1], [2], [0, 0, 0, 1, 1, 2], [0], [0]>} : vector<2x1x16xf32>, vector<2x16x128xf32>, vector<2x1x128xf32> -> vector<2x1x128xf32>
    "tpu.trace_stop"() : () -> ()
    %39 = vector.shape_cast %38 : vector<2x1x128xf32> to vector<2x128xf32>
    %40 = arith.truncf %39 : vector<2x128xf32> to vector<2x128xbf16>
    %c0_14 = arith.constant 0 : index
    %c0_15 = arith.constant 0 : index
    %41 = vector.load %arg4[%c0_14, %c0_15] : memref<128x128xbf16, #tpu.memory_space<vmem>>, vector<128x128xbf16>
    %cst_16 = arith.constant dense<0.000000e+00> : vector<2x128xf32>
    %42 = tpu.matmul %40, %41, %cst_16 {dimension_numbers = #tpu.dot_dimension_numbers<[1], [0], [0], [1], [0, 0, 1, 1], [], []>} : vector<2x128xbf16>, vector<128x128xbf16>, vector<2x128xf32> -> vector<2x128xf32>
    %c0_17 = arith.constant 0 : index
    %c0_18 = arith.constant 0 : index
    %43 = vector.load %arg5[%c0_17, %c0_18] : memref<1x128xf32, #tpu.memory_space<vmem>>, vector<1x128xf32>
    %44 = vector.broadcast %43 : vector<1x128xf32> to vector<2x128xf32>
    %45 = arith.addf %42, %44 : vector<2x128xf32>
    %cst_19 = arith.constant dense<0xFF800000> : vector<2xf32>
    %46 = vector.multi_reduction <maximumf>, %45, %cst_19 [1] : vector<2x128xf32> to vector<2xf32>
    %47 = vector.shape_cast %46 : vector<2xf32> to vector<2x1xf32>
    %48 = vector.broadcast %47 : vector<2x1xf32> to vector<2x128xf32>
    %49 = arith.subf %45, %48 : vector<2x128xf32>
    %50 = math.exp %49 : vector<2x128xf32>
    %cst_20 = arith.constant dense<0.000000e+00> : vector<2xf32>
    %51 = vector.multi_reduction <add>, %50, %cst_20 [1] : vector<2x128xf32> to vector<2xf32>
    %52 = vector.shape_cast %51 : vector<2xf32> to vector<2x1xf32>
    %53 = math.log %52 : vector<2x1xf32>
    %54 = arith.addf %47, %53 : vector<2x1xf32>
    %55 = vector.broadcast %54 : vector<2x1xf32> to vector<2x128xf32>
    %56 = arith.subf %45, %55 : vector<2x128xf32>
    %c0_21 = arith.constant 0 : index
    %c0_22 = arith.constant 0 : index
    %c0_23 = arith.constant 0 : index
    %57 = vector.load %arg6[%c0_21, %c0_22, %c0_23] : memref<1x2x128xf32, #tpu.memory_space<vmem>>, vector<1x2x128xf32>
    %58 = vector.shape_cast %57 : vector<1x2x128xf32> to vector<2x128xf32>
    %59 = vector.shape_cast %56 : vector<2x128xf32> to vector<1x2x128xf32>
    tpu.vector_store %arg6[%c0_21, %c0_22, %c0_23], %59 {strides = array<i32>} : memref<1x2x128xf32, #tpu.memory_space<vmem>>, vector<1x2x128xf32>,
    return
  }
  func.func @transform_0(%arg0: i32) -> (i32, i32, i32) {
    %c0_i32 = arith.constant 0 : i32
    %c0_i32_0 = arith.constant 0 : i32
    %c0_i32_1 = arith.constant 0 : i32
    return %arg0, %c0_i32, %c0_i32_0 : i32, i32, i32
  }
  func.func @transform_1(%arg0: i32) -> (i32, i32) {
    %c0_i32 = arith.constant 0 : i32
    %c0_i32_0 = arith.constant 0 : i32
    %c0_i32_1 = arith.constant 0 : i32
    return %c0_i32, %c0_i32_0 : i32, i32
  }
  func.func @transform_2(%arg0: i32) -> (i32, i32) {
    %c0_i32 = arith.constant 0 : i32
    %c0_i32_0 = arith.constant 0 : i32
    %c0_i32_1 = arith.constant 0 : i32
    return %c0_i32, %c0_i32_0 : i32, i32
  }
  func.func @transform_3(%arg0: i32) -> (i32, i32) {
    %c0_i32 = arith.constant 0 : i32
    %c0_i32_0 = arith.constant 0 : i32
    %c0_i32_1 = arith.constant 0 : i32
    return %c0_i32, %c0_i32_0 : i32, i32
  }
  func.func @transform_4(%arg0: i32) -> (i32, i32) {
    %c0_i32 = arith.constant 0 : i32
    %c0_i32_0 = arith.constant 0 : i32
    %c0_i32_1 = arith.constant 0 : i32
    return %c0_i32, %c0_i32_0 : i32, i32
  }
  func.func @transform_5(%arg0: i32) -> (i32, i32, i32) {
    %c0_i32 = arith.constant 0 : i32
    %c0_i32_0 = arith.constant 0 : i32
    %c0_i32_1 = arith.constant 0 : i32
    return %arg0, %c0_i32, %c0_i32_0 : i32, i32, i32
  }
}

</mosaic_0001>

<bundles_post_ra>
// kernel: tpu_custom_call.1
= control target key start
LH: loop header
LB: loop body
LE: loop exit
PB: predicated region body
PF: predicated region fallthrough
CT: control target
= control target key end

     0   :  { %10 = vsyncpa [#allocation3], 0  ;;  %s1874_s0 = inlined_call_operand.hbm [shape: bf16[4,16,128], index: 0, kind: input, shape index: {}]   ;;  %s1875_s1 = inlined_call_operand.hbm [shape: bf16[128,128], index: 1, kind: input, shape index: {}]   ;;  %s1876_s2 = inlined_call_operand.vmem [shape: f32[1,128], index: 2, kind: input, shape index: {}]   ;;  %s1877_s3 = inlined_call_operand.hbm [shape: bf16[128,128], index: 3, kind: input, shape index: {}]   ;;  %s1878_s4 = inlined_call_operand.vmem [shape: f32[1,128], index: 4, kind: input, shape index: {}]   ;;  %s1879_s5 = inlined_call_operand.hbm [shape: f32[2,2,128], index: 5, kind: output, shape index: {}]  }
   0x1   :  { %12 = vsyncpa [#allocation3 + $0x1], 0 }
   0x2   :  { %13 = vsyncpa [#allocation6], 0 }
   0x3   :  { %14 = vsyncpa [#allocation4], 0 }
   0x4   :  { %16 = vsyncpa [#allocation4 + $0x1], 0  ;;  %s1568_s18 = smov 0   ;;  %s1570_s19 = smov 0  }
   0x5   :  { %s1572_s20 = smov 0   ;;  %s1574_s21 = smov 0  }
   0x6 LB: > { %s1589_s22 = sadd.s32 4294967295, %s1527_s21   ;;  %s1087_s23 = sadd.s32 4294967294, %s1527_s21   ;;  %s1527_s21 = sphi %s1574_s21, %s1899_s21   ;;  %s1523_s20 = sphi %s1572_s20, %s1898_s20   ;;  %s1519_s19 = sphi %s1570_s19, %s1897_s19   ;;  %s1515_s18 = sphi %s1568_s18, %s1896_s18  }
   0x7   : > { %p42_p0 = scmp.ne.s32.totalorder %s1519_s19, %s1515_s18  ;;  %p1880_p1 = scmp.eq.s32.totalorder %s1589_s22, 0 }
   0x8   : > { %p156_p3 = scmp.eq.s32.totalorder %s1087_s23, 1  ;;  %p1088_p5 = scmp.ge.s32.totalorder %s1527_s21, 1 }
   0x9   : > { %p1598_p4 = por %p1880_p1, %p42_p0  ;;  %p163_p7 = scmp.lt.s32.totalorder %s1527_s21, 3 }
   0xa   : > { %p1603_p6 = por %p156_p3, %p42_p0  ;;  %s1529_s27 = smov [#allocation5]  }
   0xb   : > { %s1883_s24 = scalar_select %p1598_p4, 1, 0 }
   0xc   : > { %s1884_s25 = scalar_select %p1603_p6, 1, 0 }
   0xd   : > { %p1608_p8 = pnand %p1088_p5, %p163_p7  ;;  %s175_s28 = sshll.u32 %s1529_s27, 4  ;;  %s1612_s28 = int_to_ptr.vmem [resolvable:$true] %s175_s28 }
   0xe   : > { %s1530_s30 = smov [#allocation7]   ;;  %s1371_s9 = scalar_lea.hbm %s1875_s1, 1024 }
   0xf   : > { %p1273_p9 = pneg %p1608_p8  ;;  %s191_s6 = sshll.u32 %s1530_s30, 4  ;;  %s1623_s6 = int_to_ptr.vmem [resolvable:$true] %s191_s6 }
  0x10   : > { %p1372_p12 = scmp.ne.s32.totalorder %s1875_s1, %s1371_s9  ;;  %p1378_p5 = scmp.lt.u32.totalorder %s1371_s9, %s1875_s1 }
  0x11   : > { %p1619_p11 = pnand %p1273_p9, %p1880_p1 }
  0x13   : > { %p1373_p13 = pneg %p1619_p11 }
  0x15   : > { %p1374_p0 = pnand %p1373_p13, %p1372_p12 }
  0x17   : > { %p1375_p3 = pneg %p1374_p0 }
  0x19   : > { %p1380_p7 = pnand %p1378_p5, %p1375_p3 }
  0x1b   : > { %1383 = shalt.err (!%p1380_p7)
}
  0x1c   : > { %s1384_s14 = scalar_lea.vmem %s1612_s28, 1024  ;;  %p1392_p2 = scmp.lt.s32.totalorder %s1612_s28, %s1612_s28 }
  0x1d   : > { %p1385_p9 = scmp.ne.s32.totalorder %s1612_s28, %s1384_s14  ;;  %p1393_p12 = scmp.lt.s32.totalorder %s1384_s14, %s1384_s14 }
  0x1f   : > { %p1387_p10 = pnand %p1385_p9, %p1373_p13  ;;  %p1394_p0 = por %p1393_p12, %p1392_p2 }
  0x21   : > { %p1388_p1 = pneg %p1387_p10 }
  0x23   : > { %p1395_p6 = pnand %p1394_p0, %p1388_p1 }
  0x25   : > { %1398 = shalt.err (!%p1395_p6)
}
  0x26   : > { %s1531_s15 = smov 64   ;;  %s1532_s16 = smov 4  }
  0x27   : > { %1276 = dma.hbm_to_vmem [thread:$0]  (!%p1619_p11), %s1875_s1, 1024, %s1612_s28, [#allocation6], %s1531_s15, %s1531_s15, %s1532_s16  }
  0x28   : > { %s1399_s7 = scalar_lea.hbm %s1877_s3, 1024 }
  0x29   : > { %p1400_p1 = scmp.ne.s32.totalorder %s1877_s3, %s1399_s7  ;;  %p1406_p10 = scmp.lt.u32.totalorder %s1399_s7, %s1877_s3 }
  0x2b   : > { %p1402_p2 = pnand %p1400_p1, %p1373_p13 }
  0x2d   : > { %p1403_p6 = pneg %p1402_p2 }
  0x2f   : > { %p1408_p3 = pnand %p1406_p10, %p1403_p6 }
  0x31   : > { %1411 = shalt.err (!%p1408_p3)
}
  0x32   : > { %s1412_s28 = scalar_lea.vmem %s1623_s6, 1024  ;;  %p1420_p12 = scmp.lt.s32.totalorder %s1623_s6, %s1623_s6 }
  0x33   : > { %p1413_p5 = scmp.ne.s32.totalorder %s1623_s6, %s1412_s28  ;;  %p1421_p0 = scmp.lt.s32.totalorder %s1412_s28, %s1412_s28 }
  0x35   : > { %p1415_p7 = pnand %p1413_p5, %p1373_p13  ;;  %p1422_p1 = por %p1421_p0, %p1420_p12 }
  0x37   : > { %p1416_p9 = pneg %p1415_p7 }
  0x39   : > { %p1423_p2 = pnand %p1422_p1, %p1416_p9 }
  0x3b   : > { %1426 = shalt.err (!%p1423_p2)
}
  0x3c   : > { %1279 = dma.hbm_to_vmem [thread:$0]  (!%p1619_p11), %s1877_s3, 1024, %s1623_s6, [#allocation6], %s1531_s15, %s1531_s15, %s1532_s16  }
  0x3d   : > { %s1684_s29 = sadd.s32 1, %s1527_s21   ;;  %s29_s14 = sadd.s32 1, %s1523_s20 }
  0x3e   : > { %s26_s17 = ssub.s32 %s1527_s21, %s1684_s29  ;;  %p36_p13 = scmp.ne.s32.totalorder %s1523_s20, %s1519_s19 }
  0x3f   : > { %p27_p6 = scmp.eq.s32.totalorder %s26_s17, 0  ;;  %p37_p10 = scmp.eq.s32.totalorder %s1527_s21, 0 }
  0x40   : > { %p1887_p3 = scmp.eq.s32.totalorder %s1589_s22, 1  ;;  %p1290_p7 = scmp.lt.s32.totalorder %s1527_s21, 2 }
  0x41   : > { %s1700_s27 = scalar_select %p27_p6, %s1523_s20, %s29_s14  }
  0x42   : > { %p1694_p5 = por %p1887_p3, %p36_p13  ;;  %p38_p9 = por %p37_p10, %p36_p13 }
  0x43   : > { %s208_s30 = sand.u32 1, %s1523_s20   ;;  %s1131_s6 = sshll.u32 %s1527_s21, 8 }
  0x44   : > { %s1888_s23 = scalar_select %p1694_p5, 1, 0 }
  0x45   : > { %s1092_s7 = sshll.u32 %s208_s30, 4  ;;  %s1707_s10 = scalar_lea.hbm %s1874_s0, %s1131_s6 }
  0x46   : > { %s212_s11 = scalar_lea.vmem [#allocation2], %s1092_s7  ;;  %p1711_p11 = pnand %p1290_p7, %p38_p9 }
  0x47   : > { %s220_s28 = sshll.u32 %s212_s11, 4  ;;  %s1715_s13 = scalar_lea.sflag [#allocation3], %s208_s30  ;;  %s1709_s28 = int_to_ptr.vmem [resolvable:$true] %s220_s28 }
  0x48   : > { %s1427_s14 = scalar_lea.hbm %s1707_s10, 256  ;;  %p1429_p0 = pneg %p1711_p11 }
  0x49   : > { %p1428_p12 = scmp.ne.s32.totalorder %s1707_s10, %s1427_s14  ;;  %s1432_s6 = scalar_lea.hbm %s1874_s0, 512 }
  0x4a   : > { %p1433_p13 = scmp.lt.u32.totalorder %s1707_s10, %s1874_s0  ;;  %p1434_p6 = scmp.lt.u32.totalorder %s1432_s6, %s1427_s14 }
  0x4b   : > { %p1430_p1 = pnand %p1429_p0, %p1428_p12  ;;  %p1436_p3 = scmp.lt.u32.totalorder %s1427_s14, %s1707_s10 }
  0x4c   : > { %p1435_p10 = por %p1434_p6, %p1433_p13 }
  0x4d   : > { %p1431_p2 = pneg %p1430_p1 }
  0x4e   : > { %p1437_p7 = por %p1436_p3, %p1435_p10 }
  0x50   : > { %p1438_p9 = pnand %p1437_p7, %p1431_p2 }
  0x52   : > { %1441 = shalt.err (!%p1438_p9)
}
  0x53   : > { %s1442_s30 = scalar_lea.vmem %s1709_s28, 256  ;;  %s1533_s11 = smov [#allocation2]  }
  0x54   : > { %p1443_p12 = scmp.ne.s32.totalorder %s1709_s28, %s1442_s30  ;;  %s1447_s17 = sshll.u32 %s1533_s11, 4  ;;  %s1448_s17 = int_to_ptr.vmem [resolvable:$false] %s1447_s17 }
  0x55   : > { %s1449_s7 = scalar_lea.vmem %s1448_s17, 512  ;;  %p1450_p4 = scmp.lt.s32.totalorder %s1709_s28, %s1448_s17 }
  0x56   : > { %p1445_p1 = pnand %p1443_p12, %p1429_p0  ;;  %p1451_p13 = scmp.lt.s32.totalorder %s1449_s7, %s1442_s30 }
  0x58   : > { %p1446_p5 = pneg %p1445_p1  ;;  %p1452_p6 = por %p1451_p13, %p1450_p4 }
  0x5a   : > { %p1453_p10 = pnand %p1452_p6, %p1446_p5 }
  0x5c   : > { %1456 = shalt.err (!%p1453_p10)
}
  0x5d   : > { %1283 = dma.hbm_to_vmem [thread:$0]  (!%p1711_p11), %s1707_s10, 256, %s1709_s28, %s1715_s13, %s1531_s15, %s1531_s15, %s1532_s16  }
  0x5e   : > { %232 = sbr.rel (%p1608_p8) target bundleno = 1889 (0x761), region = 40  ;;  %s1749_s14 = sand.u32 (!%p1608_p8), 1, %s1519_s19  }
  0x5f   : > { %s1097_s6 = sshll.u32 (!%p1608_p8), %s1749_s14, 4  ;;  %s235_s8 = scalar_lea.sflag (!%p1608_p8), [#allocation3], %s1749_s14 }
  0x60   : > { %s238_s9 = scalar_lea.vmem (!%p1608_p8), [#allocation2], %s1097_s6  ;;  %p1890_p4 = scmp.ne.s32.totalorder (!%p1608_p8), %s1883_s24, 0 }
  0x65   : > { %1502 = dma.done.wait (%p1890_p4), %s235_s8, 256  }
  0x66   : > { %1504 = vsyncadd (%p1890_p4), %s235_s8, 4294967040  ;;  %p1891_p5 = scmp.eq.s32.totalorder %s1589_s22, 0 }
  0x68   : > { %1506 = dma.done.wait (%p1891_p5), [#allocation6], 2048   ;;  %p1892_p11 = pmov %p1891_p5 }
  0x69   : > { %v1333_v0 = vld [vmem:[#allocation5] sm:$0xff]   ;;  %v1334_v1 = vld [vmem:[#allocation5 + $0x8] sm:$0xff]   ;;  %v1335_v2 = vld [vmem:[#allocation5 + $0x10] sm:$0xff]   ;;  %v1534_v10 = vmov 0.0   ;;  %vm1535_vm0 = vmmov 0   ;;  %v499_v26 = vlaneseq  ;;  %vm508_vm2 = vcmask 130048  }
  0x6a   : > { %1508 = vsyncadd (%p1892_p11), [#allocation6], 4294965248  ;;  %1167 = vmatprep.subr.bf16.mxu0 %v1333_v0  ;;  %v1336_v3 = vld [vmem:[#allocation5 + $0x18] sm:$0xff]   ;;  %v1761_v4 = vld [vmem:[%s238_s9] sm:$0xff]   ;;  %1187 = vmatprep.subr.bf16.mxu1 %v1534_v10  ;;  %vm877_vm3 = vcmask 1041409   ;;  %vm969_vm4 = vcmask 1041408  }
  0x6b   : > { %1168 = vmatpush3.bf16.msra.mxu0 %v1333_v0  ;;  %v1337_v5 = vld [vmem:[#allocation5 + $0x20] sm:$0xff]   ;;  %1183 = vmatprep.mubr.bf16.mxu0 %v1761_v4  ;;  %v1338_v6 = vld [vmem:[#allocation5 + $0x28] sm:$0xff]   ;;  %v1339_v7 = vld [vmem:[#allocation5 + $0x30] sm:$0xff]   ;;  %v1781_v27 = vand.u32 127, %v499_v26  ;;  %v1536_v0 = vmov 0.0|0.0   ;;  %s1100_s10 = sshll.u32 %s1749_s14, 1 }
  0x6c   : > { %1169 = vmatprep.subr.bf16.mxu0 %v1334_v1  ;;  %v1340_v8 = vld [vmem:[#allocation5 + $0x38] sm:$0xff]   ;;  %1189 = vmatprep.mubr.msk.bf16.mxu1 %vm1535_vm0, %v1534_v10  ;;  %v1101_v11 = vld [vmem:[%s1876_s2] ss:$0 sm:$0xff]  ;;  %s1127_s28 = sshll.u32 %s1589_s22, 5  ;;  %s272_s12 = scalar_lea.vmem [#allocation8], %s1100_s10 }
  0x6d   : > { %v1764_v9 = vld [vmem:[%s238_s9 + $0x8] sm:$0xff]   ;;  %vm501_vm1 = vcmp.lt.s32.totalorder %v1781_v27, 8  ;;  %s998_s13 = sshll.u32 %s272_s12, 4  ;;  %s1830_s17 = scalar_lea.hbm %s1879_s5, %s1127_s28  ;;  %s1832_s13 = int_to_ptr.vmem [resolvable:$true] %s998_s13 }
  0x6e   : > { %v1348_v27 = vld [vmem:[#allocation7 + $0x28] sm:$0xff]   ;;  %s985_s7 = scalar_lea.sflag [#allocation4], %s1749_s14  ;;  %s1457_s6 = scalar_lea.vmem %s1832_s13, 32 }
  0x6f   : > { %1170 = vmatpush3.bf16.msra.mxu0 %v1334_v1  ;;  %p1458_p8 = scmp.ne.s32.totalorder %s1832_s13, %s1457_s6  ;;  %p1893_p0 = scmp.ne.s32.totalorder %s1888_s23, 0 }
  0x70   : > { %1171 = vmatprep.subr.bf16.mxu0 %v1335_v2  ;;  %s1537_s22 = smov [#allocation8]  }
  0x71   : > { %p1459_p2 = pnand %p1458_p8, %p1893_p0  ;;  %s1461_s8 = sshll.u32 %s1537_s22, 4  ;;  %s1462_s8 = int_to_ptr.vmem [resolvable:$false] %s1461_s8 }
  0x72   : > { %s1463_s9 = scalar_lea.vmem %s1462_s8, 64  ;;  %p1464_p7 = scmp.lt.s32.totalorder %s1832_s13, %s1462_s8 }
  0x73   : > { %1172 = vmatpush3.bf16.msra.mxu0 %v1335_v2  ;;  %p1460_p3 = pneg %p1459_p2  ;;  %p1465_p9 = scmp.lt.s32.totalorder %s1463_s9, %s1457_s6 }
  0x74   : > { %1173 = vmatprep.subr.bf16.mxu0 %v1336_v3 }
  0x75   : > { %p1466_p12 = por %p1465_p9, %p1464_p7 }
  0x77   : > { %1174 = vmatpush3.bf16.msra.mxu0 %v1336_v3  ;;  %p1467_p1 = pnand %p1466_p12, %p1460_p3 }
  0x78   : > { %1175 = vmatprep.subr.bf16.mxu0 %v1337_v5 }
  0x7b   : > { %1176 = vmatpush3.bf16.msra.mxu0 %v1337_v5 }
  0x7c   : > { %1177 = vmatprep.subr.bf16.mxu0 %v1338_v6 }
  0x7f   : > { %1178 = vmatpush3.bf16.msra.mxu0 %v1338_v6 }
  0x80   : > { %1179 = vmatprep.subr.bf16.mxu0 %v1339_v7 }
  0x83   : > { %1180 = vmatpush3.bf16.msra.mxu0 %v1339_v7 }
  0x84   : > { %1181 = vmatprep.subr.bf16.mxu0 %v1340_v8 }
  0x87   : > { %1182 = vmatpush3.bf16.msra.mxu0 %v1340_v8 }
  0x88   : > { %1227 = vmatprep.subr.bf16.mxu0 %v1534_v10 }
  0x8a   : > { %1184 = vmatmul.mubr.bf16.vlgmr.msra.gmra.mrb[0].mxu0 %v1764_v9 }
  0x8b   : > { %1243 = vmatprep.mubr.msk.bf16.mxu0 %vm1535_vm0, %v1534_v10 }
 0x15d   : > { %v1185_v12 = vpop.f32.mrb[0].mxu0 }
 0x15e   : > { %v405_v13 = vadd.f32 %v1185_v12, %v1101_v11  ;;  %v396_v14 = vpop.f32.mrb[1].mxu0 }
 0x15f   : > { %v397_v15 = vadd.f32 %v1101_v11, %v396_v14  ;;  %v1186_v16 = vpop.f32.mrb[2].mxu0 }
 0x160   : > { %v408_v17 = vadd.f32 %v1186_v16, %v1101_v11  ;;  %v399_v18 = vpop.f32.mrb[3].mxu0  ;;  %v413_v20 = vmax.f32 %v405_v13, 0.0  ;;  %v1112_v13 = vsel %vm501_vm1, 1.0, %v1534_v10 }
 0x161   : > { %v400_v19 = vadd.f32 %v1101_v11, %v399_v18  ;;  %v411_v22 = vmax.f32 %v397_v15, 0.0 }
 0x162   : > { %v414_v21 = vmax.f32 %v408_v17, 0.0 }
 0x163   : > { %v412_v23 = vmax.f32 %v400_v19, 0.0  ;;  %v1343_v19 = vld [vmem:[#allocation7] sm:$0xff]  }
 0x164   : > { %v416_v24 = vpack.c.bf16 %v414_v21, %v413_v20  ;;  %1228 = vmatpush3.bf16.msra.mxu0 %v1343_v19  ;;  %v1344_v20 = vld [vmem:[#allocation7 + $0x8] sm:$0xff]   ;;  %v1345_v21 = vld [vmem:[#allocation7 + $0x10] sm:$0xff]  }
 0x165   : > { %v415_v25 = vpack.c.bf16 %v412_v23, %v411_v22  ;;  %1229 = vmatprep.subr.bf16.mxu0 %v1534_v10  ;;  %v1346_v22 = vld [vmem:[#allocation7 + $0x18] sm:$0xff]   ;;  %v1347_v23 = vld [vmem:[#allocation7 + $0x20] sm:$0xff]  }
 0x167   : > { %1188 = vmatpush3.bf16.xpose.msra.mxu1 %v415_v25 }
 0x168   : > { %1193 = vmatprep.subr.bf16.mxu1 %v1534_v10  ;;  %1230 = vmatpush3.bf16.msra.mxu0 %v1344_v20 }
 0x169   : > { %1231 = vmatprep.subr.bf16.mxu0 %v1534_v10 }
 0x16c   : > { %1232 = vmatpush3.bf16.msra.mxu0 %v1345_v21 }
 0x16d   : > { %1233 = vmatprep.subr.bf16.mxu0 %v1534_v10 }
 0x16e   : > { %1190 = vmatmul.mubr.bf16.vlgmr.msra.gmra.mrb[0].mxu1 %v415_v25 }
 0x16f   : > { %1194 = vmatpush3.bf16.xpose.msra.mxu1 %v416_v24  ;;  %1195 = vmatprep.mubr.msk.bf16.mxu1 %vm1535_vm0, %v1534_v10 }
 0x170   : > { %1247 = vmatprep.subr.bf16.mxu1 %v1536_v0  ;;  %1234 = vmatpush3.bf16.msra.mxu0 %v1346_v22 }
 0x171   : > { %1235 = vmatprep.subr.bf16.mxu0 %v1534_v10 }
 0x174   : > { %1236 = vmatpush3.bf16.msra.mxu0 %v1347_v23 }
 0x175   : > { %1237 = vmatprep.subr.bf16.mxu0 %v1534_v10 }
 0x176   : > { %1196 = vmatmul.mubr.bf16.vlgmr.msra.gmra.mrb[4].mxu1 %v416_v24 }
 0x177   : > { %1203 = vmatprep.mubr.msk.f32.mxu1 %vm1535_vm0, %v1534_v10 }
 0x178   : > { %1238 = vmatpush3.bf16.msra.mxu0 %v1348_v27 }
 0x179   : > { %1239 = vmatprep.subr.bf16.mxu0 %v1534_v10 }
 0x241   : > { %v451_v28 = vpop.f32.mrb[0].mxu1 }
 0x242   : > { %v504_v29 = vsel %vm501_vm1, %v451_v28, -1e+30  ;;  %v1191_v30 = vpop.f32.mrb[1].mxu1  ;;  %v1349_v28 = vld [vmem:[#allocation7 + $0x30] sm:$0xff]  }
 0x243   : > { %v454_v31 = vpop.f32.mrb[2].mxu1  ;;  %v509_v32 = vsel %vm508_vm2, %v504_v29, -inf  ;;  %1240 = vmatpush3.bf16.msra.mxu0 %v1349_v28 }
 0x244   : > { %v505_v33 = vsel %vm501_vm1, %v454_v31, -1e+30  ;;  %510 = vmax.xlane.f32.xlu0 %v509_v32  ;;  %v1192_v34 = vpop.f32.mrb[3].mxu1  ;;  %1241 = vmatprep.subr.bf16.mxu0 %v1534_v10 }
 0x245   : > { %v512_v35 = vsel %vm508_vm2, %v505_v33, -inf }
 0x248   : > { %513 = vmax.xlane.f32.xlu0 %v512_v35 }
 0x249   : > { %v492_v36 = vpop.f32.mrb[4].mxu1 }
 0x24a   : > { %v506_v37 = vsel %vm501_vm1, %v492_v36, -1e+30  ;;  %v1197_v38 = vpop.f32.mrb[5].mxu1 }
 0x24b   : > { %v495_v39 = vpop.f32.mrb[6].mxu1  ;;  %v515_v40 = vsel %vm508_vm2, %v506_v37, -inf }
 0x24c   : > { %v507_v41 = vsel %vm501_vm1, %v495_v39, -1e+30  ;;  %516 = vmax.xlane.f32.xlu1 %v515_v40  ;;  %v1198_v42 = vpop.f32.mrb[7].mxu1  ;;  %v1117_v40 = vld [vmem:[%s1878_s4] ss:$0 sm:$0xff] }
 0x24d   : > { %v518_v43 = vsel %vm508_vm2, %v507_v41, -inf }
 0x250   : > { %519 = vmax.xlane.f32.xlu1 %v518_v43 }
 0x2d1   : > { %v511_v44 = vpop.xlane.xlu0 %510 }
 0x2d2   : > { %v521_v45 = vsub.f32 %v504_v29, %v511_v44  ;;  %v1350_v29 = vld [vmem:[#allocation7 + $0x38] sm:$0xff]  }
 0x2d3   : > { %1242 = vmatpush3.bf16.msra.mxu0 %v1350_v29 }
 0x2d4   : > { %v525_v46 = vmul.f32 1.442695, %v521_v45 }
 0x2d5   : > { %v514_v47 = vpop.xlane.xlu0 %513 }
 0x2d6   : > { %1351 = vpow2.f32 %v525_v46  ;;  %v522_v48 = vsub.f32 %v505_v33, %v514_v47 }
 0x2d8   : > { %v527_v49 = vmul.f32 1.442695, %v522_v48 }
 0x2d9   : > { %v517_v50 = vpop.xlane.xlu1 %516 }
 0x2da   : > { %1353 = vpow2.f32 %v527_v49  ;;  %v523_v51 = vsub.f32 %v506_v37, %v517_v50 }
 0x2dc   : > { %v529_v52 = vmul.f32 1.442695, %v523_v51 }
 0x2dd   : > { %v520_v53 = vpop.xlane.xlu1 %519 }
 0x2de   : > { %1355 = vpow2.f32 %v529_v52  ;;  %v524_v54 = vsub.f32 %v507_v41, %v520_v53 }
 0x2e0   : > { %v1352_v55 = vpop.eup %1351  ;;  %v531_v56 = vmul.f32 1.442695, %v524_v54 }
 0x2e1   : > { %v533_v57 = vsel %vm508_vm2, %v1352_v55, 0.0 }
 0x2e2   : > { %1357 = vpow2.f32 %v531_v56  ;;  %534 = vadd.xlane.f32.xlu0 %v533_v57 }
 0x2e4   : > { %v1354_v58 = vpop.eup %1353 }
 0x2e5   : > { %v536_v59 = vsel %vm508_vm2, %v1354_v58, 0.0 }
 0x2e6   : > { %537 = vadd.xlane.f32.xlu1 %v536_v59 }
 0x2e8   : > { %v1356_v60 = vpop.eup %1355 }
 0x2e9   : > { %v539_v61 = vsel %vm508_vm2, %v1356_v60, 0.0 }
 0x2ea   : > { %540 = vadd.xlane.f32.xlu0 %v539_v61 }
 0x2ec   : > { %v1358_v62 = vpop.eup %1357 }
 0x2ed   : > { %v542_v63 = vsel %vm508_vm2, %v1358_v62, 0.0 }
 0x2ee   : > { %543 = vadd.xlane.f32.xlu1 %v542_v63 }
 0x36f   : > { %v535_v1 = vpop.xlane.xlu0 %534 }
 0x370   : > { %1359 = vrcp.f32 %v535_v1 }
 0x373   : > { %v538_v2 = vpop.xlane.xlu1 %537 }
 0x374   : > { %1361 = vrcp.f32 %v538_v2 }
 0x377   : > { %v541_v3 = vpop.xlane.xlu0 %540 }
 0x378   : > { %1363 = vrcp.f32 %v541_v3 }
 0x37a   : > { %v1360_v6 = vpop.eup %1359 }
 0x37b   : > { %v544_v5 = vpop.xlane.xlu1 %543  ;;  %v549_v8 = vmul.f32 %v1360_v6, %v1352_v55 }
 0x37c   : > { %1365 = vrcp.f32 %v544_v5 }
 0x37e   : > { %v1362_v7 = vpop.eup %1361 }
 0x37f   : > { %v550_v11 = vmul.f32 %v1362_v7, %v1354_v58 }
 0x381   : > { %v1248_v12 = vpack.c.bf16 %v550_v11, %v549_v8 }
 0x382   : > { %v1364_v14 = vpop.eup %1363 }
 0x383   : > { %1249 = vmatpush3.bf16.msra.mxu1 %v1248_v12  ;;  %v551_v16 = vmul.f32 %v1364_v14, %v1356_v60 }
 0x384   : > { %1250 = vmatprep.subr.bf16.mxu1 %v1536_v0 }
 0x386   : > { %v1366_v15 = vpop.eup %1365  ;;  %1204 = vmatmul.mubr.msk.f32.vlgmr.msra.gmra.mrb[8].mxu1 %vm508_vm2, %v1112_v13 }
 0x387   : > { %v552_v17 = vmul.f32 %v1366_v15, %v1358_v62  ;;  %1210 = vmatprep.mubr.msk.f32.mxu1 %vm1535_vm0, %v1534_v10 }
 0x389   : > { %v1251_v18 = vpack.c.bf16 %v552_v17, %v551_v16 }
 0x38b   : > { %1252 = vmatpush3.bf16.msra.mxu1 %v1251_v18 }
 0x38c   : > { %1253 = vmatprep.subr.bf16.mxu1 %v1536_v0 }
 0x38e   : > { %1211 = vmatmul.mubr.msk.f32.vlgmr.msra.gmra.mrb[10].mxu1 %vm508_vm2, %v1112_v13 }
 0x38f   : > { %1255 = vmatpush3.bf16.msra.mxu1 %v1761_v4  ;;  %1217 = vmatprep.mubr.msk.f32.mxu1 %vm1535_vm0, %v1534_v10 }
 0x390   : > { %1256 = vmatprep.subr.bf16.mxu1 %v1536_v0 }
 0x459   : > { %v623_v4 = vpop.f32.mrb[8].mxu1 }
 0x45a   : > { %v1205_v24 = vpop.f32.mrb[9].mxu1  ;;  %1218 = vmatmul.mubr.msk.f32.vlgmr.msra.gmra.mrb[12].mxu1 %vm508_vm2, %v623_v4 }
 0x45b   : > { %1258 = vmatpush3.bf16.msra.mxu1 %v1764_v9  ;;  %1224 = vmatprep.mubr.msk.f32.mxu1 %vm1535_vm0, %v1534_v10 }
 0x461   : > { %v693_v25 = vpop.f32.mrb[10].mxu1 }
 0x462   : > { %v1212_v26 = vpop.f32.mrb[11].mxu1  ;;  %1225 = vmatmul.mubr.msk.f32.vlgmr.msra.gmra.mrb[14].mxu1 %vm508_vm2, %v693_v25 }
 0x52d   : > { %v770_v30 = vpop.f32.mrb[12].mxu1 }
 0x52e   : > { %v1219_v31 = vpop.f32.mrb[13].mxu1  ;;  %v847_v32 = vpack.c.bf16 %v770_v30, %v770_v30 }
 0x530   : > { %v874_v36 = vunpack.c.l.b16 %v847_v32 }
 0x535   : > { %v843_v9 = vpop.f32.mrb[14].mxu1 }
 0x536   : > { %v848_v33 = vpack.c.bf16 %v843_v9, %v843_v9  ;;  %v1226_v34 = vpop.f32.mrb[15].mxu1 }
 0x538   : > { %v875_v35 = vunpack.c.l.b16 %v848_v33 }
 0x53a   : > { %v876_v37 = vrot.slane %v875_v35, 7 }
 0x53c   : > { %v878_v38 = vsel %vm877_vm3, %v876_v37, %v874_v36 }
 0x53d   : > { %v879_v39 = vpack.c.b16 %v878_v38, %v878_v38 }
 0x53f   : > { %1244 = vmatmul.mubr.bf16.vlgmr.msra.gmra.mrb[4].mxu0 %v879_v39 }
 0x612   : > { %v963_v10 = vpop.f32.mrb[4].mxu0 }
 0x613   : > { %v964_v41 = vadd.f32 %v1117_v40, %v963_v10  ;;  %v1245_v42 = vpop.f32.mrb[5].mxu0 }
 0x614   : > { %v966_v43 = vpop.f32.mrb[6].mxu0 }
 0x615   : > { %v1246_v44 = vpop.f32.mrb[7].mxu0  ;;  %v970_v45 = vsel %vm969_vm4, %v964_v41, -inf }
 0x616   : > { %971 = vmax.xlane.f32.xlu0 %v970_v45 }
 0x6a3   : > { %v972_v46 = vpop.xlane.xlu0 %971 }
 0x6a4   : > { %v973_v47 = vsub.f32 %v964_v41, %v972_v46 }
 0x6a6   : > { %v974_v48 = vmul.f32 1.442695, %v973_v47 }
 0x6a8   : > { %1367 = vpow2.f32 %v974_v48 }
 0x6b2   : > { %v1368_v49 = vpop.eup %1367 }
 0x6b3   : > { %v976_v50 = vsel %vm969_vm4, %v1368_v49, 0.0 }
 0x6b4   : > { %977 = vadd.xlane.f32.xlu1 %v976_v50 }
 0x741   : > { %v978_v51 = vpop.xlane.xlu1 %977 }
 0x742   : > { %1369 = vlog2.f32 %v978_v51 }
 0x74c   : > { %v1370_v52 = vpop.eup %1369 }
 0x74d   : > { %v980_v53 = vmul.f32 0.6931472, %v1370_v52 }
 0x74f   : > { %v981_v54 = vadd.f32 %v980_v53, %v972_v46 }
 0x751   : > { %v982_v55 = vsub.f32 %v964_v41, %v981_v54 }
 0x753   : > { %983 = vst [vmem:[%s272_s12] sm:$0x3] %v982_v55 }
 0x754   : > { %1470 = shalt.err (!%p1467_p1)
}
 0x755   : > { %s1471_s14 = scalar_lea.hbm %s1830_s17, 32  ;;  %s1475_s15 = scalar_lea.hbm %s1879_s5, 64 }
 0x756   : > { %p1472_p13 = scmp.ne.s32.totalorder %s1830_s17, %s1471_s14  ;;  %p1476_p4 = scmp.lt.u32.totalorder %s1830_s17, %s1879_s5 }
 0x757   : > { %p1477_p5 = scmp.lt.u32.totalorder %s1475_s15, %s1471_s14  ;;  %p1479_p8 = scmp.lt.u32.totalorder %s1471_s14, %s1830_s17 }
 0x758   : > { %p1473_p6 = pnand %p1472_p13, %p1893_p0 }
 0x759   : > { %p1478_p11 = por %p1477_p5, %p1476_p4 }
 0x75a   : > { %p1474_p10 = pneg %p1473_p6 }
 0x75b   : > { %p1480_p2 = por %p1479_p8, %p1478_p11 }
 0x75d   : > { %p1481_p3 = pnand %p1480_p2, %p1474_p10 }
 0x75f   : > { %1484 = shalt.err (!%p1481_p3)
}
 0x760   : > { %1271 = dma.vmem_to_hbm [thread:$0]  (%p1893_p0), %s1832_s13, 32, %s1830_s17, %s985_s7  }
 0x761 PF: > { %s1010_s28 = sand.u32 1, %s1515_s18   ;;  %p1894_p7 = scmp.ne.s32.totalorder %s1884_s25, 0 }
 0x762   : > { %p1895_p9 = scmp.ge.s32.totalorder %s1527_s21, 2  ;;  %s1011_s12 = scalar_lea.sflag [#allocation4], %s1010_s28 }
 0x764   : > { %p1285_p12 = pnand %p1895_p9, %p1894_p7 }
 0x766   : > { %1510 = dma.done.wait (!%p1285_p12), %s1011_s12, 32  }
 0x767   : > { %1512 = vsyncadd (!%p1285_p12), %s1011_s12, 4294967264  ;;  %p19_p1 = scmp.ge.s32.totalorder %s1684_s29, 4   ;;  %s1896_s18 = smov %s1519_s19 }
 0x768   : > { %s1897_s19 = smov %s1523_s20  ;;  %s1898_s20 = smov %s1700_s27 }
 0x769   : > { %s1899_s21 = smov %s1684_s29  ;;  %21 = sbr.rel (!%p19_p1) target bundleno = 6 (0x6), region = 93 }
 0x770   :  { %1016 = vsyncpa [#allocation3], 1 }
 0x771   :  { %1018 = vsyncpa [#allocation3 + $0x1], 1 }
 0x772   :  { %1019 = vsyncpa [#allocation6], 1 }
 0x773   :  { %1020 = vsyncpa [#allocation4], 1 }
 0x774   :  { %1022 = vsyncpa [#allocation4 + $0x1], 1 }

</bundles_post_ra>
